<compile_context>
chip_gen: v7x
topology: tpu7x:2x2x1
jax: 0.10.0
libtpu: 0.0.40
codegen_flags: <defaults>
</compile_context>

<pallas_src>
import functools

import numpy as np

import jax
import jax.numpy as jnp
from jax import lax
from jax.experimental import pallas as pl
from jax.experimental.pallas import tpu as pltpu


def _se_conv_kernel(x_ref, mask_ref, w_ref, b_ref, fc1w_ref, fc1b_ref,
                    fc2w_ref, fc2b_ref, o_ref, *, H, W, K):
    HW = H * W
    P = (K - 1) // 2
    inv_hw = 1.0 / float(HW)

    x = x_ref[...]                                           # (Cpad, HW) f32

    # ---- build the im2col-style stacked operand (K*K*Cpad, HW) --------------
    # Each tap is a pure lane roll of the flattened input (XLU); one mask
    # multiply zeroes the lanes that wrapped across a row / image boundary.
    pieces = []
    for dy in range(K):
        for dx in range(K):
            off = (dy - P) * W + (dx - P)                    # flattened tap shift
            pieces.append(x if off == 0
                          else pltpu.roll(x, shift=(-off) % HW, axis=1))
    stacked = pieces[0] if len(pieces) == 1 else jnp.concatenate(pieces, axis=0)
    stacked = stacked * mask_ref[...]                        # (K*K*Cpad, HW)

    # ---- conv (+ folded BatchNorm) as ONE MXU matmul, then bias + ReLU ------
    acc = jnp.dot(w_ref[...], stacked, preferred_element_type=jnp.float32)
    conv = jnp.maximum(acc + b_ref[...], 0.0)                # (Cout, HW)

    # ---- squeeze: global average pool (every lane is a valid position) ------
    se = jnp.sum(conv, axis=1, keepdims=True) * inv_hw       # (Cout, 1)

    # ---- excite: fc1 -> ReLU -> fc2 -> sigmoid -------------------------------
    h1 = jnp.dot(fc1w_ref[...], se, preferred_element_type=jnp.float32)
    h1 = jnp.maximum(h1 + fc1b_ref[...], 0.0)                # (Cmid, 1)
    g = jnp.dot(fc2w_ref[...], h1, preferred_element_type=jnp.float32)
    g = jax.nn.sigmoid(g + fc2b_ref[...])                    # (Cout, 1)

    # ---- single unmasked, lane-dense store of the gated activation ----------
    o_ref[...] = (conv * g).astype(o_ref.dtype)


def se_conv_block(x, conv_w, conv_b, bn_gamma, bn_beta, bn_mean, bn_var,
                  fc1_w, fc1_b, fc2_w, fc2_b, *, eps=1e-5, stride=1):
    """Fused SEConvBlock forward (inference-mode BatchNorm), NCHW layout."""
    if stride != 1:
        raise NotImplementedError("stride > 1 not supported")  # TODO(synk)
    B, Cin, H, W = x.shape
    Cout, Cin_w, K, K2 = conv_w.shape
    assert Cin_w == Cin and K == K2
    assert K % 2 == 1, "even kernel sizes change the output size (unsupported)"
    Cmid = fc1_w.reshape(fc1_w.shape[0], -1).shape[0]

    P = (K - 1) // 2
    HW = H * W
    Cpad = ((Cin + 7) // 8) * 8            # sublane-tile-aligned channel count
    KKC = K * K * Cpad
    f32 = jnp.float32

    # Fold inference-mode BatchNorm into the conv weight / bias (free, wrapper).
    s = bn_gamma.astype(f32) / jnp.sqrt(bn_var.astype(f32) + eps)          # (Cout,)
    w_fold = conv_w.astype(f32) * s[:, None, None, None]                   # (Cout,Cin,K,K)
    b_fold = (conv_b.astype(f32) - bn_mean.astype(f32)) * s + bn_beta.astype(f32)

    # Lane-dense input layout: spatial flattened onto the lane axis.
    x_flat = x.reshape(B, Cin, HW).astype(f32)
    if Cpad != Cin:                        # align to one sublane tile (tiny pad)
        x_flat = jnp.pad(x_flat, ((0, 0), (0, Cpad - Cin), (0, 0)))
        w_fold = jnp.pad(w_fold, ((0, 0), (0, Cpad - Cin), (0, 0), (0, 0)))

    # One fused (Cout, K*K*Cpad) weight; column order = (dy, dx, cin).
    w_fused = jnp.transpose(w_fold, (0, 2, 3, 1)).reshape(Cout, KKC)
    b_col = b_fold.reshape(Cout, 1)
    fc1w = fc1_w.reshape(Cmid, Cout).astype(f32)
    fc1b = fc1_b.reshape(Cmid, 1).astype(f32)
    fc2w = fc2_w.reshape(Cout, Cmid).astype(f32)
    fc2b = fc2_b.reshape(Cout, 1).astype(f32)

    # Compile-time boundary masks (numpy -> constant): zero the lanes of each
    # rolled tap that wrapped across a row / image boundary.
    hh = np.arange(HW) // W
    ww = np.arange(HW) % W
    rows = []
    for dy in range(K):
        for dx in range(K):
            oy, ox = dy - P, dx - P
            valid = ((hh + oy >= 0) & (hh + oy < H) &
                     (ww + ox >= 0) & (ww + ox < W)).astype(np.float32)
            rows.append(np.broadcast_to(valid[None, :], (Cpad, HW)))
    mask = jnp.asarray(np.concatenate(rows, axis=0))                       # (KKC, HW)

    kernel = functools.partial(_se_conv_kernel, H=H, W=W, K=K)

    out_flat = pl.pallas_call(
        kernel,
        out_shape=jax.ShapeDtypeStruct((B, Cout, HW), f32),
        grid_spec=pltpu.PrefetchScalarGridSpec(
            num_scalar_prefetch=0,
            grid=(B,),
            in_specs=[
                pl.BlockSpec((None, Cpad, HW), lambda b: (b, 0, 0)),
                pl.BlockSpec((KKC, HW), lambda b: (0, 0)),
                pl.BlockSpec((Cout, KKC), lambda b: (0, 0)),
                pl.BlockSpec((Cout, 1), lambda b: (0, 0)),
                pl.BlockSpec((Cmid, Cout), lambda b: (0, 0)),
                pl.BlockSpec((Cmid, 1), lambda b: (0, 0)),
                pl.BlockSpec((Cout, Cmid), lambda b: (0, 0)),
                pl.BlockSpec((Cout, 1), lambda b: (0, 0)),
            ],
            out_specs=pl.BlockSpec((None, Cout, HW), lambda b: (b, 0, 0)),
        ),
        compiler_params=pltpu.CompilerParams(
            dimension_semantics=("parallel",)),
    )(x_flat, mask, w_fused, b_col, fc1w, fc1b, fc2w, fc2b)

    return out_flat.reshape(B, Cout, H, W)


def _reference(x, conv_w, conv_b, gamma, beta, mean, var, eps,
               fc1_w, fc1_b, fc2_w, fc2_b):
    Cout = conv_w.shape[0]
    Cmid = fc1_w.reshape(fc1_w.shape[0], -1).shape[0]
    P = (conv_w.shape[2] - 1) // 2
    y = lax.conv_general_dilated(
        x, conv_w, window_strides=(1, 1), padding=[(P, P), (P, P)],
        dimension_numbers=("NCHW", "OIHW", "NCHW"))
    y = y + conv_b.reshape(1, -1, 1, 1)
    y = (y - mean.reshape(1, -1, 1, 1)) * (
        gamma.reshape(1, -1, 1, 1) / jnp.sqrt(var.reshape(1, -1, 1, 1) + eps)
    ) + beta.reshape(1, -1, 1, 1)
    y = jnp.maximum(y, 0.0)
    s = jnp.mean(y, axis=(2, 3), keepdims=True)                   # (B, Cout, 1, 1)
    h1 = jnp.einsum("mc,bcij->bmij", fc1_w.reshape(Cmid, Cout), s)
    h1 = jnp.maximum(h1 + fc1_b.reshape(1, -1, 1, 1), 0.0)
    g = jnp.einsum("cm,bmij->bcij", fc2_w.reshape(Cout, Cmid), h1)
    g = jax.nn.sigmoid(g + fc2_b.reshape(1, -1, 1, 1))
    return y * g


if __name__ == "__main__":
    key = jax.random.PRNGKey(0)
    keys = jax.random.split(key, 12)

    B, Cin, H, W = 2, 4, 16, 16
    K = 3
    Cout = 16               # "filters"
    reduction = 4
    Cmid = Cout // reduction
    eps = 1e-5              # BatchNorm2d default (module's mu/epsilon are unused by it)

    x = jax.random.normal(keys[0], (B, Cin, H, W), dtype=jnp.float32)

    # Conv2d weight: kaiming_normal_(nonlinearity='relu') -> std = sqrt(2 / fan_in)
    fan_in = Cin * K * K
    conv_w = jax.random.normal(keys[1], (Cout, Cin, K, K), jnp.float32) * jnp.sqrt(2.0 / fan_in)
    bound = 1.0 / jnp.sqrt(fan_in)
    conv_b = jax.random.uniform(keys[2], (Cout,), jnp.float32, -bound, bound)

    # BatchNorm2d (inference-mode) parameters.
    bn_gamma = 1.0 + 0.1 * jax.random.normal(keys[3], (Cout,), jnp.float32)
    bn_beta = 0.1 * jax.random.normal(keys[4], (Cout,), jnp.float32)
    bn_mean = 0.1 * jax.random.normal(keys[5], (Cout,), jnp.float32)
    bn_var = jax.random.uniform(keys[6], (Cout,), jnp.float32, 0.5, 1.5)

    # SE block 1x1 convs (kaiming_normal_).
    fc1_w = jax.random.normal(keys[7], (Cmid, Cout), jnp.float32) * jnp.sqrt(2.0 / Cout)
    fc1_b = jax.random.uniform(keys[8], (Cmid,), jnp.float32,
                               -1.0 / jnp.sqrt(Cout), 1.0 / jnp.sqrt(Cout))
    fc2_w = jax.random.normal(keys[9], (Cout, Cmid), jnp.float32) * jnp.sqrt(2.0 / Cmid)
    fc2_b = jax.random.uniform(keys[10], (Cout,), jnp.float32,
                               -1.0 / jnp.sqrt(Cmid), 1.0 / jnp.sqrt(Cmid))

    out = se_conv_block(x, conv_w, conv_b, bn_gamma, bn_beta, bn_mean, bn_var,
                        fc1_w, fc1_b, fc2_w, fc2_b, eps=eps)
    out = jax.block_until_ready(out)
    ref = _reference(x, conv_w, conv_b, bn_gamma, bn_beta, bn_mean, bn_var, eps,
                     fc1_w, fc1_b, fc2_w, fc2_b)
    assert out.shape == (B, Cout, H, W)
    assert jnp.allclose(out, ref, atol=1e-4, rtol=1e-4), (
        float(jnp.max(jnp.abs(out - ref))))

    # Also exercise the module-default kernel=1 (pointwise conv) code path.
    conv_w1 = jax.random.normal(keys[11], (Cout, Cin, 1, 1), jnp.float32) * jnp.sqrt(2.0 / Cin)
    out1 = se_conv_block(x, conv_w1, conv_b, bn_gamma, bn_beta, bn_mean, bn_var,
                         fc1_w, fc1_b, fc2_w, fc2_b, eps=eps)
    out1 = jax.block_until_ready(out1)
    ref1 = _reference(x, conv_w1, conv_b, bn_gamma, bn_beta, bn_mean, bn_var, eps,
                      fc1_w, fc1_b, fc2_w, fc2_b)
    assert jnp.allclose(out1, ref1, atol=1e-4, rtol=1e-4), (
        float(jnp.max(jnp.abs(out1 - ref1))))

    print("KERNEL_OK")
</pallas_src>

<mosaic_0001>
module attributes {stable_mosaic.version = 11 : i64} {
  func.func @_se_conv_kernel(%arg0: i32, %arg1: memref<1x8x256xf32, #tpu.memory_space<vmem>>, %arg2: memref<72x256xf32, #tpu.memory_space<vmem>>, %arg3: memref<16x72xf32, #tpu.memory_space<vmem>>, %arg4: memref<16x1xf32, #tpu.memory_space<vmem>>, %arg5: memref<4x16xf32, #tpu.memory_space<vmem>>, %arg6: memref<4x1xf32, #tpu.memory_space<vmem>>, %arg7: memref<16x4xf32, #tpu.memory_space<vmem>>, %arg8: memref<16x1xf32, #tpu.memory_space<vmem>>, %arg9: memref<1x16x256xf32, #tpu.memory_space<vmem>>) attributes {dimension_semantics = [#tpu.dimension_semantics<parallel>], iteration_bounds = array<i64: 2>, scalar_prefetch = 0 : i64, scratch_operands = 0 : i64, tpu.core_type = #tpu.core_type<tc>, window_params = [{transform_indices = @transform_0, window_bounds = array<i64: 1, 8, 256>}, {pipeline_mode = #tpu.pipeline_mode<synchronous>, transform_indices = @transform_1, window_bounds = array<i64: 72, 256>}, {pipeline_mode = #tpu.pipeline_mode<synchronous>, transform_indices = @transform_2, window_bounds = array<i64: 16, 72>}, {pipeline_mode = #tpu.pipeline_mode<synchronous>, transform_indices = @transform_3, window_bounds = array<i64: 16, 1>}, {pipeline_mode = #tpu.pipeline_mode<synchronous>, transform_indices = @transform_4, window_bounds = array<i64: 4, 16>}, {pipeline_mode = #tpu.pipeline_mode<synchronous>, transform_indices = @transform_5, window_bounds = array<i64: 4, 1>}, {pipeline_mode = #tpu.pipeline_mode<synchronous>, transform_indices = @transform_6, window_bounds = array<i64: 16, 4>}, {pipeline_mode = #tpu.pipeline_mode<synchronous>, transform_indices = @transform_7, window_bounds = array<i64: 16, 1>}, {transform_indices = @transform_8, window_bounds = array<i64: 1, 16, 256>}]} {
    %c0 = arith.constant 0 : index
    %c0_0 = arith.constant 0 : index
    %c0_1 = arith.constant 0 : index
    %0 = vector.load %arg1[%c0, %c0_0, %c0_1] : memref<1x8x256xf32, #tpu.memory_space<vmem>>, vector<1x8x256xf32>
    %1 = vector.shape_cast %0 : vector<1x8x256xf32> to vector<8x256xf32>
    %c17_i32 = arith.constant 17 : i32
    %2 = tpu.dynamic_rotate %1 by %c17_i32 dim 1 : vector<8x256xf32>, i32 -> vector<8x256xf32>
    %c16_i32 = arith.constant 16 : i32
    %3 = tpu.dynamic_rotate %1 by %c16_i32 dim 1 : vector<8x256xf32>, i32 -> vector<8x256xf32>
    %c15_i32 = arith.constant 15 : i32
    %4 = tpu.dynamic_rotate %1 by %c15_i32 dim 1 : vector<8x256xf32>, i32 -> vector<8x256xf32>
    %c1_i32 = arith.constant 1 : i32
    %5 = tpu.dynamic_rotate %1 by %c1_i32 dim 1 : vector<8x256xf32>, i32 -> vector<8x256xf32>
    %c255_i32 = arith.constant 255 : i32
    %6 = tpu.dynamic_rotate %1 by %c255_i32 dim 1 : vector<8x256xf32>, i32 -> vector<8x256xf32>
    %c241_i32 = arith.constant 241 : i32
    %7 = tpu.dynamic_rotate %1 by %c241_i32 dim 1 : vector<8x256xf32>, i32 -> vector<8x256xf32>
    %c240_i32 = arith.constant 240 : i32
    %8 = tpu.dynamic_rotate %1 by %c240_i32 dim 1 : vector<8x256xf32>, i32 -> vector<8x256xf32>
    %c239_i32 = arith.constant 239 : i32
    %9 = tpu.dynamic_rotate %1 by %c239_i32 dim 1 : vector<8x256xf32>, i32 -> vector<8x256xf32>
    %10 = tpu.concatenate %2, %3, %4, %5, %1, %6, %7, %8, %9 in 0 : vector<8x256xf32>, vector<8x256xf32>, vector<8x256xf32>, vector<8x256xf32>, vector<8x256xf32>, vector<8x256xf32>, vector<8x256xf32>, vector<8x256xf32>, vector<8x256xf32> -> vector<72x256xf32>
    %c0_2 = arith.constant 0 : index
    %c0_3 = arith.constant 0 : index
    %11 = vector.load %arg2[%c0_2, %c0_3] : memref<72x256xf32, #tpu.memory_space<vmem>>, vector<72x256xf32>
    %12 = arith.mulf %10, %11 : vector<72x256xf32>
    %c0_4 = arith.constant 0 : index
    %c0_5 = arith.constant 0 : index
    %13 = vector.load %arg3[%c0_4, %c0_5] : memref<16x72xf32, #tpu.memory_space<vmem>>, vector<16x72xf32>
    %cst = arith.constant dense<0.000000e+00> : vector<16x256xf32>
    %14 = tpu.matmul %13, %12, %cst {dimension_numbers = #tpu.dot_dimension_numbers<[1], [0], [0], [1], [0, 0, 1, 1], [], []>} : vector<16x72xf32>, vector<72x256xf32>, vector<16x256xf32> -> vector<16x256xf32>
    %c0_6 = arith.constant 0 : index
    %c0_7 = arith.constant 0 : index
    %15 = vector.load %arg4[%c0_6, %c0_7] : memref<16x1xf32, #tpu.memory_space<vmem>>, vector<16x1xf32>
    %16 = vector.broadcast %15 : vector<16x1xf32> to vector<16x256xf32>
    %17 = arith.addf %14, %16 : vector<16x256xf32>
    %cst_8 = arith.constant 0.000000e+00 : f32
    %18 = vector.broadcast %cst_8 : f32 to vector<16x256xf32>
    %19 = arith.maximumf %17, %18 : vector<16x256xf32>
    %cst_9 = arith.constant dense<0.000000e+00> : vector<16xf32>
    %20 = vector.multi_reduction <add>, %19, %cst_9 [1] : vector<16x256xf32> to vector<16xf32>
    %21 = vector.shape_cast %20 : vector<16xf32> to vector<16x1xf32>
    %cst_10 = arith.constant 3.906250e-03 : f32
    %22 = vector.broadcast %cst_10 : f32 to vector<16x1xf32>
    %23 = arith.mulf %21, %22 : vector<16x1xf32>
    %c0_11 = arith.constant 0 : index
    %c0_12 = arith.constant 0 : index
    %24 = vector.load %arg5[%c0_11, %c0_12] : memref<4x16xf32, #tpu.memory_space<vmem>>, vector<4x16xf32>
    %cst_13 = arith.constant dense<0.000000e+00> : vector<4x1xf32>
    %25 = tpu.matmul %24, %23, %cst_13 {dimension_numbers = #tpu.dot_dimension_numbers<[1], [0], [0], [1], [0, 0, 1, 1], [], []>} : vector<4x16xf32>, vector<16x1xf32>, vector<4x1xf32> -> vector<4x1xf32>
    %c0_14 = arith.constant 0 : index
    %c0_15 = arith.constant 0 : index
    %26 = vector.load %arg6[%c0_14, %c0_15] : memref<4x1xf32, #tpu.memory_space<vmem>>, vector<4x1xf32>
    %27 = arith.addf %25, %26 : vector<4x1xf32>
    %cst_16 = arith.constant 0.000000e+00 : f32
    %28 = vector.broadcast %cst_16 : f32 to vector<4x1xf32>
    %29 = arith.maximumf %27, %28 : vector<4x1xf32>
    %c0_17 = arith.constant 0 : index
    %c0_18 = arith.constant 0 : index
    %30 = vector.load %arg7[%c0_17, %c0_18] : memref<16x4xf32, #tpu.memory_space<vmem>>, vector<16x4xf32>
    %cst_19 = arith.constant dense<0.000000e+00> : vector<16x1xf32>
    %31 = tpu.matmul %30, %29, %cst_19 {dimension_numbers = #tpu.dot_dimension_numbers<[1], [0], [0], [1], [0, 0, 1, 1], [], []>} : vector<16x4xf32>, vector<4x1xf32>, vector<16x1xf32> -> vector<16x1xf32>
    %c0_20 = arith.constant 0 : index
    %c0_21 = arith.constant 0 : index
    %32 = vector.load %arg8[%c0_20, %c0_21] : memref<16x1xf32, #tpu.memory_space<vmem>>, vector<16x1xf32>
    %33 = arith.addf %31, %32 : vector<16x1xf32>
    %34 = arith.negf %33 : vector<16x1xf32>
    %35 = math.exp %34 : vector<16x1xf32>
    %cst_22 = arith.constant 1.000000e+00 : f32
    %36 = vector.broadcast %cst_22 : f32 to vector<16x1xf32>
    %37 = arith.addf %36, %35 : vector<16x1xf32>
    %38 = arith.divf %36, %37 : vector<16x1xf32>
    %39 = vector.broadcast %38 : vector<16x1xf32> to vector<16x256xf32>
    %40 = arith.mulf %19, %39 : vector<16x256xf32>
    %c0_23 = arith.constant 0 : index
    %c0_24 = arith.constant 0 : index
    %c0_25 = arith.constant 0 : index
    %41 = vector.load %arg9[%c0_23, %c0_24, %c0_25] : memref<1x16x256xf32, #tpu.memory_space<vmem>>, vector<1x16x256xf32>
    %42 = vector.shape_cast %41 : vector<1x16x256xf32> to vector<16x256xf32>
    %43 = vector.shape_cast %40 : vector<16x256xf32> to vector<1x16x256xf32>
    tpu.vector_store %arg9[%c0_23, %c0_24, %c0_25], %43 {strides = array<i32>} : memref<1x16x256xf32, #tpu.memory_space<vmem>>, vector<1x16x256xf32>,
    return
  }
  func.func @transform_0(%arg0: i32) -> (i32, i32, i32) {
    %c0_i32 = arith.constant 0 : i32
    %c0_i32_0 = arith.constant 0 : i32
    %c0_i32_1 = arith.constant 0 : i32
    return %arg0, %c0_i32, %c0_i32_0 : i32, i32, i32
  }
  func.func @transform_1(%arg0: i32) -> (i32, i32) {
    %c0_i32 = arith.constant 0 : i32
    %c0_i32_0 = arith.constant 0 : i32
    %c0_i32_1 = arith.constant 0 : i32
    return %c0_i32, %c0_i32_0 : i32, i32
  }
  func.func @transform_2(%arg0: i32) -> (i32, i32) {
    %c0_i32 = arith.constant 0 : i32
    %c0_i32_0 = arith.constant 0 : i32
    %c0_i32_1 = arith.constant 0 : i32
    return %c0_i32, %c0_i32_0 : i32, i32
  }
  func.func @transform_3(%arg0: i32) -> (i32, i32) {
    %c0_i32 = arith.constant 0 : i32
    %c0_i32_0 = arith.constant 0 : i32
    %c0_i32_1 = arith.constant 0 : i32
    return %c0_i32, %c0_i32_0 : i32, i32
  }
  func.func @transform_4(%arg0: i32) -> (i32, i32) {
    %c0_i32 = arith.constant 0 : i32
    %c0_i32_0 = arith.constant 0 : i32
    %c0_i32_1 = arith.constant 0 : i32
    return %c0_i32, %c0_i32_0 : i32, i32
  }
  func.func @transform_5(%arg0: i32) -> (i32, i32) {
    %c0_i32 = arith.constant 0 : i32
    %c0_i32_0 = arith.constant 0 : i32
    %c0_i32_1 = arith.constant 0 : i32
    return %c0_i32, %c0_i32_0 : i32, i32
  }
  func.func @transform_6(%arg0: i32) -> (i32, i32) {
    %c0_i32 = arith.constant 0 : i32
    %c0_i32_0 = arith.constant 0 : i32
    %c0_i32_1 = arith.constant 0 : i32
    return %c0_i32, %c0_i32_0 : i32, i32
  }
  func.func @transform_7(%arg0: i32) -> (i32, i32) {
    %c0_i32 = arith.constant 0 : i32
    %c0_i32_0 = arith.constant 0 : i32
    %c0_i32_1 = arith.constant 0 : i32
    return %c0_i32, %c0_i32_0 : i32, i32
  }
  func.func @transform_8(%arg0: i32) -> (i32, i32, i32) {
    %c0_i32 = arith.constant 0 : i32
    %c0_i32_0 = arith.constant 0 : i32
    %c0_i32_1 = arith.constant 0 : i32
    return %arg0, %c0_i32, %c0_i32_0 : i32, i32, i32
  }
}

</mosaic_0001>

<bundles_post_ra>
// kernel: tpu_custom_call.1
= control target key start
LH: loop header
LB: loop body
LE: loop exit
PB: predicated region body
PF: predicated region fallthrough
CT: control target
= control target key end

     0   :  { %13 = vsyncpa [#allocation3], 0  ;;  %s1331_s0 = inlined_call_operand.vmem [shape: f32[2,8,256], index: 0, kind: input, shape index: {}]   ;;  %s1332_s1 = inlined_call_operand.hbm [shape: f32[72,256], index: 1, kind: input, shape index: {}]   ;;  %s1333_s2 = inlined_call_operand.vmem [shape: f32[16,72], index: 2, kind: input, shape index: {}]   ;;  %s1334_s3 = inlined_call_operand.vmem [shape: f32[16,1], index: 3, kind: input, shape index: {}]   ;;  %s1335_s4 = inlined_call_operand.vmem [shape: f32[4,16], index: 4, kind: input, shape index: {}]   ;;  %s1336_s5 = inlined_call_operand.vmem [shape: f32[4,1], index: 5, kind: input, shape index: {}]   ;;  %s1337_s6 = inlined_call_operand.vmem [shape: f32[16,4], index: 6, kind: input, shape index: {}]   ;;  %s1338_s7 = inlined_call_operand.vmem [shape: f32[16,1], index: 7, kind: input, shape index: {}]   ;;  %s1339_s8 = inlined_call_operand.hbm [shape: f32[2,16,256], index: 8, kind: output, shape index: {}]  }
   0x1   :  { %14 = vsyncpa [#allocation4], 0 }
   0x2   :  { %16 = vsyncpa [#allocation4 + $0x1], 0  ;;  %s1104_s27 = smov 0   ;;  %s1106_s28 = smov 0  }
   0x3   :  { %s1108_s29 = smov 0   ;;  %s1110_s30 = smov 0  }
   0x4 LB: > { %s1125_s9 = sadd.s32 4294967295, %s1040_s30   ;;  %s810_s10 = sadd.s32 4294967294, %s1040_s30   ;;  %s1040_s30 = sphi %s1110_s30, %s1355_s30   ;;  %s1036_s29 = sphi %s1108_s29, %s1354_s29   ;;  %s1032_s28 = sphi %s1106_s28, %s1353_s28   ;;  %s1028_s27 = sphi %s1104_s27, %s1352_s27  }
   0x5   : > { %s1129_s11 = sadd.s32 1, %s1040_s30   ;;  %s202_s12 = sadd.s32 1, %s1036_s29 }
   0x6   : > { %s199_s13 = ssub.s32 %s1040_s30, %s1129_s11  ;;  %p212_p0 = scmp.ne.s32.totalorder %s1036_s29, %s1032_s28 }
   0x7   : > { %p200_p1 = scmp.eq.s32.totalorder %s199_s13, 0  ;;  %p213_p2 = scmp.eq.s32.totalorder %s1125_s9, 1 }
   0x8   : > { %p218_p3 = scmp.ne.s32.totalorder %s1032_s28, %s1028_s27  ;;  %p219_p4 = scmp.eq.s32.totalorder %s810_s10, 1 }
   0x9   : > { %s1140_s14 = scalar_select %p200_p1, %s1036_s29, %s202_s12  }
   0xa   : > { %p1142_p5 = por %p213_p2, %p212_p0  ;;  %p1146_p6 = por %p219_p4, %p218_p3 }
   0xb   : > { %p811_p7 = scmp.ge.s32.totalorder %s1040_s30, 1  ;;  %p226_p8 = scmp.lt.s32.totalorder %s1040_s30, 3 }
   0xc   : > { %s1343_s15 = scalar_select %p1142_p5, 1, 0 }
   0xd   : > { %s1344_s16 = scalar_select %p1146_p6, 1, 0 }
   0xe   : > { %p1340_p9 = scmp.eq.s32.totalorder %s1125_s9, 0  ;;  %p1153_p10 = pnand %p811_p7, %p226_p8 }
   0xf   : > { %s1042_s18 = smov [#allocation2]   ;;  %s946_s23 = scalar_lea.hbm %s1332_s1, 2304 }
  0x10   : > { %s1345_s17 = scalar_select %p1153_p10, 1, 0 }
  0x11   : > { %s238_s19 = sshll.u32 %s1042_s18, 4  ;;  %p877_p11 = pneg %p1153_p10  ;;  %s239_s19 = int_to_ptr.vmem [resolvable:$true] %s238_s19 }
  0x12   : > { %p947_p13 = scmp.ne.s32.totalorder %s1332_s1, %s946_s23  ;;  %p953_p3 = scmp.lt.u32.totalorder %s946_s23, %s1332_s1 }
  0x13   : > { %p1161_p12 = pnand %p1340_p9, %p877_p11 }
  0x15   : > { %p948_p0 = pneg %p1161_p12 }
  0x17   : > { %p949_p1 = pnand %p948_p0, %p947_p13 }
  0x19   : > { %p950_p2 = pneg %p949_p1 }
  0x1b   : > { %p955_p4 = pnand %p953_p3, %p950_p2 }
  0x1d   : > { %958 = shalt.err (!%p955_p4)
}
  0x1e   : > { %s959_s12 = scalar_lea.vmem %s239_s19, 2304  ;;  %p967_p9 = scmp.lt.s32.totalorder %s239_s19, %s239_s19 }
  0x1f   : > { %p960_p7 = scmp.ne.s32.totalorder %s239_s19, %s959_s12  ;;  %p968_p6 = scmp.lt.s32.totalorder %s959_s12, %s959_s12 }
  0x21   : > { %p962_p8 = pnand %p960_p7, %p948_p0  ;;  %p969_p5 = por %p968_p6, %p967_p9 }
  0x23   : > { %p963_p11 = pneg %p962_p8 }
  0x25   : > { %p970_p10 = pnand %p969_p5, %p963_p11 }
  0x27   : > { %973 = shalt.err (!%p970_p10)
}
  0x28   : > { %s1043_s13 = smov 256   ;;  %s1044_s18 = smov 16  }
  0x29   : > { %880 = dma.hbm_to_vmem [thread:$0]  (!%p1161_p12), %s1332_s1, 2304, %s239_s19, [#allocation3], %s1043_s13, %s1043_s13, %s1044_s18  }
  0x2a   : > { %p1347_p13 = scmp.ne.s32.totalorder %s1345_s17, 0 }
  0x2b   : > { %p1348_p1 = scmp.eq.s32.totalorder (!%p1347_p13), %s1125_s9, 0 }
  0x2c   : > { %280 = sbr.rel (%p1347_p13) target bundleno = 1185 (0x4a1), region = 52 }
  0x33   : > { %1019 = dma.done.wait (%p1348_p1), [#allocation3], 2304   ;;  %p1349_p0 = pmov %p1348_p1 }
  0x34   : > { %p314_p5 = scmp.lt.s32.totalorder %s1125_s9, 1  ;;  %s1045_s19 = smov 16   ;;  %v1051_v2 = vmov 0.0   ;;  %v1053_v3 = vmov 0   ;;  %v417_v4 = vld [vmem:[%s1334_s3] sm:$0xff]  ;;  %v418_v5 = vld [vmem:[%s1334_s3 + $0x8] sm:$0xff]  ;;  %v325_v6 = vlaneseq }
  0x35   : > { %1021 = vsyncadd (%p1349_p0), [#allocation3], 4294964992  ;;  %s1046_s17 = smov 17   ;;  %s1047_s10 = smov 15   ;;  %500 = vmatprep.mubr.f32.mxu0 %v1051_v2  ;;  %936 = vset.pattern.permute.xlu0 %v1053_v3  ;;  %v381_v10 = vld [vmem:[#allocation2 + $0x10] sm:$0xff]  ;;  %v379_v11 = vld [vmem:[#allocation2] sm:$0xff] }
  0x36   : > { %s315_s23 = scalar_select %p314_p5, %s1125_s9, 1  ;;  %937 = vset.pattern.permute.xlu1 %v1053_v3  ;;  %v1221_v7 = vand.u32 127, %v325_v6  ;;  %v380_v12 = vld [vmem:[#allocation2 + $0x8] sm:$0xff]  ;;  %v382_v13 = vld [vmem:[#allocation2 + $0x18] sm:$0xff]  ;;  %v383_v28 = vld [vmem:[#allocation2 + $0x20] sm:$0xff]  ;;  %vm429_vm8 = vcmask 588800  }
  0x37   : > { %s1048_s12 = smov 1   ;;  %s1049_s13 = smov 127   ;;  %v384_v29 = vld [vmem:[#allocation2 + $0x28] sm:$0xff]  ;;  %v385_v32 = vld [vmem:[#allocation2 + $0x30] sm:$0xff]  ;;  %v386_v33 = vld [vmem:[#allocation2 + $0x38] sm:$0xff]  ;;  %vm1056_vm9 = vmmov 0  }
  0x38   : > { %s832_s24 = sshll.u32 %s315_s23, 4  ;;  %s1050_s18 = smov 113   ;;  %vm334_vm0 = vcmp.lt.s32.totalorder %v1221_v7, 16  ;;  %vm327_vm1 = vcmp.lt.s32.totalorder %v1221_v7, 17  ;;  %vm341_vm2 = vcmp.lt.s32.totalorder %v1221_v7, 15  ;;  %vm348_vm3 = vcmp.lt.s32.totalorder %v1221_v7, 1  ;;  %844 = vmatprep.mubr.msk.f32.mxu1 %vm1056_vm9, %v1051_v2 }
  0x39   : > { %s318_s26 = scalar_lea.vmem %s1331_s0, %s832_s24  ;;  %s1052_s21 = smov 112   ;;  %vm355_vm4 = vcmp.lt.s32.totalorder %v1221_v7, 127  ;;  %v388_v38 = vld [vmem:[#allocation2 + $0x48] sm:$0xff]  ;;  %v387_v39 = vld [vmem:[#allocation2 + $0x40] sm:$0xff]  ;;  %v389_v44 = vld [vmem:[#allocation2 + $0x50] sm:$0xff]  ;;  %vm362_vm5 = vcmp.lt.s32.totalorder %v1221_v7, 113 }
  0x3a   : > { %v1192_v0 = vld [vmem:[%s318_s26] sm:$0xff]  ;;  %v1197_v1 = vld [vmem:[%s318_s26 + $0x8] sm:$0xff]  ;;  %s1054_s22 = smov 111   ;;  %v390_v45 = vld [vmem:[#allocation2 + $0x58] sm:$0xff]  ;;  %vm369_vm6 = vcmp.lt.s32.totalorder %v1221_v7, 112  ;;  %vm376_vm7 = vcmp.lt.s32.totalorder %v1221_v7, 111 }
  0x3b   : > { %330 = vrot.lane.b32.xlu1 %v1192_v0, %s1045_s19  ;;  %321 = vrot.lane.b32.xlu0 %v1192_v0, %s1046_s17  ;;  %v406_v50 = vmul.f32 %v388_v38, %v1197_v1  ;;  %v405_v51 = vmul.f32 %v387_v39, %v1192_v0  ;;  %v391_v60 = vld [vmem:[#allocation2 + $0x60] sm:$0xff]  ;;  %v392_v61 = vld [vmem:[#allocation2 + $0x68] sm:$0xff]  ;;  %v1055_v39 = vmov 0.0|0.0   ;;  %vm527_vm10 = vcmask 130048   ;;  %s833_s23 = sshll.u32 %s1125_s9, 9  ;;  %p1350_p9 = scmp.ne.s32.totalorder %s1343_s15, 0 }
  0x3c   : > { %v415_v7 = vld [vmem:[%s1333_s2] sm:$0xff]  ;;  %868 = vmatprep.subr.bf16.mxu1 %v1055_v39  ;;  %vm606_vm11 = vcmask 31744   ;;  %vm613_vm12 = vcmask 1043456   ;;  %s1287_s9 = scalar_lea.hbm %s1339_s8, %s833_s23 }
  0x3f   : > { %332 = vrot.lane.b32.xlu1 %v1197_v1, %s1045_s19  ;;  %323 = vrot.lane.b32.xlu0 %v1197_v1, %s1046_s17  ;;  %s1057_s17 = smov [#allocation5]  }
  0x43   : > { %339 = vrot.lane.b32.xlu1 %v1197_v1, %s1047_s10  ;;  %337 = vrot.lane.b32.xlu0 %v1192_v0, %s1047_s10  ;;  %s978_s10 = sshll.u32 %s1057_s17, 4  ;;  %s979_s10 = int_to_ptr.vmem [resolvable:$false] %s978_s10 }
  0x47   : > { %346 = vrot.lane.b32.xlu1 %v1197_v1, %s1048_s12  ;;  %344 = vrot.lane.b32.xlu0 %v1192_v0, %s1048_s12  ;;  %s980_s12 = scalar_lea.vmem %s979_s10, 1024 }
  0x4b   : > { %353 = vrot.lane.b32.xlu1 %v1197_v1, %s1049_s13  ;;  %351 = vrot.lane.b32.xlu0 %v1192_v0, %s1049_s13  ;;  %s311_s13 = sand.u32 1, %s1032_s28  }
  0x4c   : > { %s1289_s20 = scalar_lea.sflag [#allocation4], %s311_s13 }
  0x4f   : > { %360 = vrot.lane.b32.xlu1 %v1197_v1, %s1050_s18  ;;  %358 = vrot.lane.b32.xlu0 %v1192_v0, %s1050_s18  ;;  %s816_s18 = sshll.u32 %s311_s13, 5 }
  0x53   : > { %367 = vrot.lane.b32.xlu1 %v1197_v1, %s1052_s21  ;;  %365 = vrot.lane.b32.xlu0 %v1192_v0, %s1052_s21  ;;  %s313_s21 = scalar_lea.vmem [#allocation5], %s816_s18 }
  0x57   : > { %374 = vrot.lane.b32.xlu1 %v1197_v1, %s1054_s22  ;;  %372 = vrot.lane.b32.xlu0 %v1192_v0, %s1054_s22  ;;  %v393_v0 = vld [vmem:[#allocation2 + $0x70] sm:$0xff]  ;;  %v394_v1 = vld [vmem:[#allocation2 + $0x78] sm:$0xff]  ;;  %s736_s22 = sshll.u32 %s313_s21, 4  ;;  %s1278_s22 = int_to_ptr.vmem [resolvable:$true] %s736_s22 }
  0x58   : > { %s974_s26 = scalar_lea.vmem %s1278_s22, 512  ;;  %p981_p2 = scmp.lt.s32.totalorder %s1278_s22, %s979_s10 }
  0x59   : > { %p975_p6 = scmp.ne.s32.totalorder %s1278_s22, %s974_s26  ;;  %p982_p3 = scmp.lt.s32.totalorder %s980_s12, %s974_s26 }
  0x5b   : > { %421 = vperm.xlu0 %936, %v417_v4   ;;  %426 = vperm.xlu1 %937, %v418_v5   ;;  %p976_p10 = pnand %p975_p6, %p1350_p9  ;;  %p983_p4 = por %p982_p3, %p981_p2 }
  0x5d   : > { %p977_p12 = pneg %p976_p10 }
  0x5f   : > { %p984_p7 = pnand %p983_p4, %p977_p12 }
  0xad   : > { %v331_v8 = vpop.permute.xlu1 %330  ;;  %v322_v9 = vpop.permute.xlu0 %321 }
  0xb1   : > { %v333_v14 = vpop.permute.xlu1 %332  ;;  %v324_v15 = vpop.permute.xlu0 %323 }
  0xb2   : > { %v335_v16 = vsel %vm334_vm0, %v331_v8, %v333_v14  ;;  %v336_v17 = vsel %vm334_vm0, %v333_v14, %v331_v8  ;;  %v328_v18 = vsel %vm327_vm1, %v322_v9, %v324_v15  ;;  %v329_v19 = vsel %vm327_vm1, %v324_v15, %v322_v9  ;;  %v395_v14 = vld [vmem:[#allocation2 + $0x80] sm:$0xff] }
  0xb3   : > { %v399_v20 = vmul.f32 %v381_v10, %v336_v17  ;;  %v397_v21 = vmul.f32 %v379_v11, %v329_v19  ;;  %v398_v22 = vmul.f32 %v380_v12, %v328_v18  ;;  %v400_v23 = vmul.f32 %v382_v13, %v335_v16  ;;  %v396_v12 = vld [vmem:[#allocation2 + $0x88] sm:$0xff] }
  0xb5   : > { %v340_v24 = vpop.permute.xlu1 %339  ;;  %v338_v25 = vpop.permute.xlu0 %337  ;;  %v852_v26 = vpack.c.bf16 %v400_v23, %v398_v22  ;;  %v854_v27 = vpack.c.bf16 %v399_v20, %v397_v21  ;;  %v416_v22 = vld [vmem:[%s1333_s2 + $0x8] sm:$0xff] }
  0xb6   : > { %v342_v30 = vsel %vm341_vm2, %v338_v25, %v340_v24  ;;  %v343_v31 = vsel %vm341_vm2, %v340_v24, %v338_v25 }
  0xb7   : > { %853 = vmatprep.subr.bf16.mxu0 %v852_v26  ;;  %v401_v40 = vmul.f32 %v383_v28, %v343_v31  ;;  %v402_v41 = vmul.f32 %v384_v29, %v342_v30 }
  0xb8   : > { %855 = vmatpush1.bf16.msra.mxu0 %v854_v27 }
  0xb9   : > { %v347_v34 = vpop.permute.xlu1 %346  ;;  %v345_v35 = vpop.permute.xlu0 %344 }
  0xba   : > { %v349_v36 = vsel %vm348_vm3, %v345_v35, %v347_v34  ;;  %v350_v37 = vsel %vm348_vm3, %v347_v34, %v345_v35 }
  0xbb   : > { %v403_v42 = vmul.f32 %v385_v32, %v350_v37  ;;  %v404_v43 = vmul.f32 %v386_v33, %v349_v36 }
  0xbd   : > { %v354_v46 = vpop.permute.xlu1 %353  ;;  %v352_v47 = vpop.permute.xlu0 %351  ;;  %v856_v48 = vpack.c.bf16 %v404_v43, %v402_v41  ;;  %v858_v49 = vpack.c.bf16 %v403_v42, %v401_v40 }
  0xbe   : > { %v356_v52 = vsel %vm355_vm4, %v352_v47, %v354_v46  ;;  %v357_v53 = vsel %vm355_vm4, %v354_v46, %v352_v47  ;;  %v602_v46 = vld [vmem:[%s1337_s6] sm:$0xff] }
  0xbf   : > { %v407_v54 = vmul.f32 %v389_v44, %v356_v52  ;;  %v408_v55 = vmul.f32 %v390_v45, %v357_v53  ;;  %857 = vmatprep.subr.bf16.mxu0 %v856_v48  ;;  %v525_v45 = vld [vmem:[%s1335_s4] sm:$0xf]  ;;  %v605_v52 = vld [vmem:[%s1338_s7 + $0x8] sm:$0xff] }
  0xc0   : > { %859 = vmatpush1.bf16.msra.mxu0 %v858_v49  ;;  %v604_v53 = vld [vmem:[%s1338_s7] sm:$0xff] }
  0xc1   : > { %v361_v56 = vpop.permute.xlu1 %360  ;;  %v359_v57 = vpop.permute.xlu0 %358  ;;  %v860_v58 = vpack.c.bf16 %v408_v55, %v406_v50  ;;  %v862_v59 = vpack.c.bf16 %v407_v54, %v405_v51  ;;  %v603_v51 = vld [vmem:[%s1337_s6 + $0x8] sm:$0xff] }
  0xc2   : > { %v363_v62 = vsel %vm362_vm5, %v359_v57, %v361_v56  ;;  %v364_v63 = vsel %vm362_vm5, %v361_v56, %v359_v57 }
  0xc3   : > { %861 = vmatprep.subr.bf16.mxu0 %v860_v58  ;;  %v409_v8 = vmul.f32 %v391_v60, %v363_v62  ;;  %v410_v9 = vmul.f32 %v392_v61, %v364_v63 }
  0xc4   : > { %863 = vmatpush1.bf16.msra.mxu0 %v862_v59 }
  0xc5   : > { %v368_v3 = vpop.permute.xlu1 %367  ;;  %v366_v4 = vpop.permute.xlu0 %365 }
  0xc6   : > { %v370_v5 = vsel %vm369_vm6, %v366_v4, %v368_v3  ;;  %v371_v6 = vsel %vm369_vm6, %v368_v3, %v366_v4 }
  0xc7   : > { %v411_v10 = vmul.f32 %v393_v0, %v370_v5  ;;  %v412_v11 = vmul.f32 %v394_v1, %v371_v6 }
  0xc9   : > { %v375_v13 = vpop.permute.xlu1 %374  ;;  %v373_v15 = vpop.permute.xlu0 %372  ;;  %v864_v16 = vpack.c.bf16 %v412_v11, %v410_v9  ;;  %v866_v17 = vpack.c.bf16 %v411_v10, %v409_v8 }
  0xca   : > { %v377_v18 = vsel %vm376_vm7, %v373_v15, %v375_v13  ;;  %v378_v19 = vsel %vm376_vm7, %v375_v13, %v373_v15 }
  0xcb   : > { %v414_v20 = vmul.f32 %v396_v12, %v378_v19  ;;  %865 = vmatprep.subr.bf16.mxu0 %v864_v16  ;;  %v413_v21 = vmul.f32 %v395_v14, %v377_v18 }
  0xcc   : > { %867 = vmatpush1.bf16.msra.mxu0 %v866_v17 }
  0xcd   : > { %452 = vmatprep.subr.mxu0 %v414_v20 }
  0xd0   : > { %453 = vmatpush1.msra.mxu0 %v413_v21 }
  0xd1   : > { %819 = vmatmul.mubr.msk.f32.vlgmr.msra.gmra.mrb[0].mxu0 %vm429_vm8, %v415_v7 }
  0xd2   : > { %506 = vmatprep.mubr.f32.mxu0 %v1051_v2  ;;  %v526_v2 = vld [vmem:[%s1336_s5] sm:$0xf] }
  0xd5   : > { %820 = vmatmul.mubr.msk.f32.gmra.mrb[2].mxu0 %vm429_vm8, %v416_v22 }
  0xda   : > { %v422_v23 = vpop.permute.xlu0 %421  ;;  %v427_v28 = vpop.permute.xlu1 %426 }
 0x1a4   : > { %v502_v24 = vpop.f32.mrb[0].mxu0 }
 0x1a5   : > { %v1244_v25 = vadd.f32 %v502_v24, %v422_v23  ;;  %v504_v26 = vpop.f32.mrb[1].mxu0 }
 0x1a6   : > { %v1246_v27 = vadd.f32 %v504_v26, %v422_v23 }
 0x1a7   : > { %v513_v29 = vmax.f32 %v1244_v25, 0.0 }
 0x1a8   : > { %v514_v30 = vmax.f32 %v1246_v27, 0.0  ;;  %v508_v31 = vpop.f32.mrb[2].mxu0 }
 0x1a9   : > { %v1250_v32 = vadd.f32 %v508_v31, %v427_v28  ;;  %v510_v33 = vpop.f32.mrb[3].mxu0 }
 0x1aa   : > { %v511_v34 = vadd.f32 %v510_v33, %v427_v28  ;;  %v517_v35 = vadd.f32 %v514_v30, %v513_v29 }
 0x1ab   : > { %v515_v36 = vmax.f32 %v1250_v32, 0.0 }
 0x1ac   : > { %v516_v37 = vmax.f32 %v511_v34, 0.0  ;;  %518 = vadd.xlane.f32.xlu1 %v517_v35 }
 0x1ae   : > { %v520_v38 = vadd.f32 %v516_v37, %v515_v36 }
 0x1b0   : > { %521 = vadd.xlane.f32.xlu0 %v520_v38 }
 0x239   : > { %v519_v40 = vpop.xlane.xlu1 %518 }
 0x23a   : > { %v523_v42 = vmul.f32 0.00390625, %v519_v40 }
 0x23d   : > { %v522_v41 = vpop.xlane.xlu0 %521 }
 0x23e   : > { %v524_v43 = vmul.f32 0.00390625, %v522_v41 }
 0x240   : > { %v869_v44 = vpack.c.bf16 %v524_v43, %v523_v42 }
 0x242   : > { %870 = vmatpush3.bf16.msra.mxu1 %v869_v44 }
 0x245   : > { %845 = vmatmul.mubr.msk.f32.vlgmr.msra.gmra.mrb[0].mxu1 %vm527_vm10, %v525_v45 }
 0x246   : > { %849 = vmatprep.mubr.msk.f32.mxu1 %vm606_vm11, %v602_v46 }
 0x318   : > { %v597_v47 = vpop.f32.mrb[0].mxu1 }
 0x319   : > { %v598_v48 = vadd.f32 %v597_v47, %v526_v2  ;;  %v846_v49 = vpop.f32.mrb[1].mxu1 }
 0x31b   : > { %v601_v50 = vmax.f32 %v598_v48, 0.0 }
 0x31d   : > { %847 = vmatprep.subr.msk.mxu1 %vm613_vm12, %v601_v50 }
 0x31e   : > { %848 = vmatpush3.msk.msra.mxu1 %vm613_vm12, %v601_v50 }
 0x31f   : > { %850 = vmatmul.mubr.msk.f32.vlgmr.msra.gmra.mrb[2].mxu1 %vm606_vm11, %v603_v51 }
 0x3f2   : > { %v851_v54 = vpop.f32.mrb[2].mxu1 }
 0x3f3   : > { %v689_v55 = vadd.f32 %v851_v54, %v605_v52  ;;  %v683_v56 = vpop.f32.mrb[3].mxu1 }
 0x3f4   : > { %v684_v57 = vadd.f32 %v683_v56, %v604_v53 }
 0x3f5   : > { %v826_v58 = vmul.f32 -1.442695, %v689_v55 }
 0x3f6   : > { %v825_v59 = vmul.f32 -1.442695, %v684_v57 }
 0x3f7   : > { %938 = vpow2.f32 %v826_v58 }
 0x3f8   : > { %940 = vpow2.f32 %v825_v59 }
 0x401   : > { %v939_v60 = vpop.eup %938 }
 0x402   : > { %v941_v61 = vpop.eup %940  ;;  %v699_v62 = vadd.f32 1.0, %v939_v60 }
 0x403   : > { %v698_v63 = vadd.f32 1.0, %v941_v61 }
 0x404   : > { %942 = vrcp.f32 %v699_v62 }
 0x405   : > { %944 = vrcp.f32 %v698_v63 }
 0x40e   : > { %v943_v0 = vpop.eup %942 }
 0x40f   : > { %v945_v1 = vpop.eup %944  ;;  %711 = vperm.xlu1 %937, %v943_v0  }
 0x410   : > { %706 = vperm.xlu0 %936, %v945_v1  }
 0x48e   : > { %v712_v3 = vpop.permute.xlu1 %711 }
 0x48f   : > { %v716_v4 = vmul.f32 %v712_v3, %v515_v36  ;;  %v717_v5 = vmul.f32 %v712_v3, %v516_v37  ;;  %v707_v6 = vpop.permute.xlu0 %706 }
 0x490   : > { %v714_v8 = vmul.f32 %v707_v6, %v513_v29  ;;  %v715_v9 = vmul.f32 %v707_v6, %v514_v30 }
 0x491   : > { %720 = vst [vmem:[%s313_s21 + $0x10] sm:$0xff] %v716_v4  ;;  %721 = vst [vmem:[%s313_s21 + $0x18] sm:$0xff] %v717_v5 }
 0x492   : > { %718 = vst [vmem:[%s313_s21] sm:$0xff] %v714_v8  ;;  %719 = vst [vmem:[%s313_s21 + $0x8] sm:$0xff] %v715_v9 }
 0x493   : > { %987 = shalt.err (!%p984_p7)
}
 0x494   : > { %s988_s13 = scalar_lea.hbm %s1287_s9, 512  ;;  %s992_s23 = scalar_lea.hbm %s1339_s8, 1024 }
 0x495   : > { %p989_p8 = scmp.ne.s32.totalorder %s1287_s9, %s988_s13  ;;  %p993_p1 = scmp.lt.u32.totalorder %s1287_s9, %s1339_s8 }
 0x496   : > { %p994_p0 = scmp.lt.u32.totalorder %s992_s23, %s988_s13  ;;  %p996_p6 = scmp.lt.u32.totalorder %s988_s13, %s1287_s9 }
 0x497   : > { %p990_p11 = pnand %p989_p8, %p1350_p9 }
 0x498   : > { %p995_p5 = por %p994_p0, %p993_p1 }
 0x499   : > { %p991_p13 = pneg %p990_p11 }
 0x49a   : > { %p997_p10 = por %p996_p6, %p995_p5 }
 0x49c   : > { %p998_p12 = pnand %p997_p10, %p991_p13 }
 0x49e   : > { %1001 = shalt.err (!%p998_p12)
}
 0x49f   : > { %s1058_s26 = smov 256  }
 0x4a0   : > { %875 = dma.vmem_to_hbm [thread:$0]  (%p1350_p9), %s1278_s22, 512, %s1287_s9, %s1289_s20, %s1058_s26, %s1058_s26, %s1045_s19  }
 0x4a1 PF: > { %p887_p2 = scmp.ge.s32.totalorder %s1040_s30, 2  ;;  %s751_s17 = sand.u32 1, %s1028_s27  }
 0x4a2   : > { %p1351_p3 = scmp.ne.s32.totalorder %s1344_s16, 0  ;;  %s752_s10 = scalar_lea.sflag [#allocation4], %s751_s17 }
 0x4a4   : > { %p882_p4 = pnand %p887_p2, %p1351_p3 }
 0x4a6   : > { %1023 = dma.done.wait (!%p882_p4), %s752_s10, 512  }
 0x4a7   : > { %1025 = vsyncadd (!%p882_p4), %s752_s10, 4294966784  ;;  %p19_p7 = scmp.ge.s32.totalorder %s1129_s11, 4   ;;  %s1352_s27 = smov %s1032_s28 }
 0x4a8   : > { %s1353_s28 = smov %s1036_s29  ;;  %s1354_s29 = smov %s1140_s14 }
 0x4a9   : > { %s1355_s30 = smov %s1129_s11  ;;  %21 = sbr.rel (!%p19_p7) target bundleno = 4 (0x4), region = 92 }
 0x4b0   :  { %757 = vsyncpa [#allocation3], 1 }
 0x4b1   :  { %759 = vsyncpa [#allocation3 + $0x1], 1 }
 0x4b2   :  { %760 = vsyncpa [#allocation4], 1 }
 0x4b3   :  { %762 = vsyncpa [#allocation4 + $0x1], 1 }

</bundles_post_ra>
